<compile_context>
chip_gen: v7x
topology: tpu7x:2x2x1
jax: 0.10.0
libtpu: 0.0.40
codegen_flags: <defaults>
</compile_context>

<pallas_src>
import functools
import math

import jax
import jax.numpy as jnp
from jax.experimental import pallas as pl
from jax.experimental.pallas import tpu as pltpu


# ------------------------------ Pallas kernel -------------------------------

def _attention_head_kernel(x_ref, wqkv_ref, bqkv_ref, o_ref, *,
                           batch, seq, dim_head):
    """Single grid step: fully fused single-head attention.

    x_ref:    (B*S, Dm)   f32 activations (batch flattened into MXU M dim)
    wqkv_ref: (Dm, 3*Dh)  bf16 [Wq * 1/sqrt(Dh) | Wk | Wv]
    bqkv_ref: (1, 3*Dh)   f32  [bq * 1/sqrt(Dh) | bk | bv]
    o_ref:    (S, B*Dh)   f32  lane-dense output slab
    """
    # Fused QKV projection: one MXU pass over all B*S tokens, f32 accumulation.
    qkv = jnp.dot(x_ref[...].astype(jnp.bfloat16), wqkv_ref[...],
                  preferred_element_type=jnp.float32) + bqkv_ref[...]

    # Slice Q/K/V on the 2-D (B*S, 3*Dh) slab, then split batch off the major
    # dim (cheap reshape). The 1/sqrt(Dh) scale is already folded into Q.
    q = qkv[:, 0 * dim_head:1 * dim_head].reshape(batch, seq, dim_head)
    k = qkv[:, 1 * dim_head:2 * dim_head].reshape(batch, seq, dim_head)
    v = qkv[:, 2 * dim_head:3 * dim_head].reshape(batch, seq, dim_head)

    # logits = q @ k^T per batch (contract on Dh), f32 accumulation.
    s = jnp.einsum("bqd,bkd->bqk",
                   q.astype(jnp.bfloat16), k.astype(jnp.bfloat16),
                   preferred_element_type=jnp.float32)

    # Numerically-stable softmax in f32; divide via EUP approx reciprocal.
    s = s - jnp.max(s, axis=-1, keepdims=True)
    p = jnp.exp(s)
    p = p * pl.reciprocal(jnp.sum(p, axis=-1, keepdims=True), approx=True)

    o = jnp.einsum("bqk,bkd->bqd",
                   p.astype(jnp.bfloat16), v.astype(jnp.bfloat16),
                   preferred_element_type=jnp.float32)           # (B, S, Dh)

    # Lane-dense store: per-batch (S, Dh) panels side by side -> (S, B*Dh),
    # a full-lane (multiple-of-128) unmasked store.
    o_ref[...] = jnp.concatenate([o[b] for b in range(batch)],
                                 axis=-1).astype(o_ref.dtype)


# ----------------------- parameter fusion (once per model) -------------------

def fuse_qkv_params(wq, bq, wk, bk, wv, bv):
    """Fuse Q/K/V params once (hoisted out of the per-forward path).

    Folds the 1/sqrt(dim_head) attention scale into the Q columns and pre-casts
    the fused weight to bf16 (halves HBM->VMEM weight traffic / VMEM footprint).
    Weights are stored as (in, out), i.e. the transpose of PyTorch's Linear.weight.
    """
    dh = wq.shape[1]
    inv_scale = 1.0 / math.sqrt(float(dh))            # dot_scale = sqrt(Dh)
    wqkv = jnp.concatenate([wq * inv_scale, wk, wv], axis=1).astype(jnp.bfloat16)
    bqkv = jnp.concatenate([bq * inv_scale, bk, bv], axis=0)
    bqkv = bqkv.reshape(1, 3 * dh).astype(jnp.float32)
    return wqkv, bqkv                                  # (Dm, 3*Dh), (1, 3*Dh)


# -------------------------------- wrapper ------------------------------------

def attention_head(x, wqkv, bqkv):
    """x: (B, S, Dm) f32; wqkv: (Dm, 3*Dh) bf16; bqkv: (1, 3*Dh) f32."""
    B, S, Dm = x.shape
    Dh = wqkv.shape[1] // 3

    kern = functools.partial(_attention_head_kernel,
                             batch=B, seq=S, dim_head=Dh)

    out = pl.pallas_call(
        kern,
        out_shape=jax.ShapeDtypeStruct((S, B * Dh), jnp.float32),
        grid=(1,),                                   # single step: overhead paid once
        in_specs=[
            pl.BlockSpec((B * S, Dm), lambda i: (0, 0)),   # all tokens, one slab
            pl.BlockSpec((Dm, 3 * Dh), lambda i: (0, 0)),  # fused bf16 weights
            pl.BlockSpec((1, 3 * Dh), lambda i: (0, 0)),   # fused bias
        ],
        out_specs=pl.BlockSpec((S, B * Dh), lambda i: (0, 0)),
        compiler_params=pltpu.CompilerParams(
            dimension_semantics=("arbitrary",),
            vmem_limit_bytes=32 * 1024 * 1024,       # explicit, safe on v5e/v6e/v7x
        ),
    )(x.reshape(B * S, Dm), wqkv, bqkv)

    # Un-plumb the lane-dense (S, B*Dh) slab back to (B, S, Dh).
    return out.reshape(S, B, Dh).transpose(1, 0, 2)


# ------------------------------ pure-JAX reference ---------------------------

def attention_head_ref(x, wq, bq, wk, bk, wv, bv):
    q = x @ wq + bq
    k = x @ wk + bk
    v = x @ wv + bv
    dh = wq.shape[1]
    s = jnp.einsum("bqd,bkd->bqk", q, k) / math.sqrt(float(dh))
    p = jax.nn.softmax(s, axis=-1)
    return jnp.einsum("bqk,bkd->bqd", p, v)


# ---------------------------------- main -------------------------------------

if __name__ == "__main__":
    # Small shapes consistent with the module (dim_model scaled down, dim_head
    # at the paper default 64, seq a multiple of 8 for clean (8,128) tiling).
    B, S, DIM_MODEL, DIM_HEAD = 4, 16, 128, 64

    key = jax.random.PRNGKey(0)
    ks = jax.random.split(key, 8)
    x = jax.random.normal(ks[0], (B, S, DIM_MODEL), jnp.float32)
    w_scale = 0.05
    wq = w_scale * jax.random.normal(ks[1], (DIM_MODEL, DIM_HEAD), jnp.float32)
    bq = w_scale * jax.random.normal(ks[2], (DIM_HEAD,), jnp.float32)
    wk = w_scale * jax.random.normal(ks[3], (DIM_MODEL, DIM_HEAD), jnp.float32)
    bk = w_scale * jax.random.normal(ks[4], (DIM_HEAD,), jnp.float32)
    wv = w_scale * jax.random.normal(ks[5], (DIM_MODEL, DIM_HEAD), jnp.float32)
    bv = w_scale * jax.random.normal(ks[6], (DIM_HEAD,), jnp.float32)

    # Parameter fusion (concat + scale folding + bf16 cast) done once, not per call.
    wqkv, bqkv = fuse_qkv_params(wq, bq, wk, bk, wv, bv)

    out = attention_head(x, wqkv, bqkv)
    out = jax.block_until_ready(out)

    assert out.shape == (B, S, DIM_HEAD), out.shape
    assert bool(jnp.all(jnp.isfinite(out)))

    ref = attention_head_ref(x, wq, bq, wk, bk, wv, bv)
    # bf16 MXU operands + approx reciprocal -> loose-but-safe tolerance.
    assert bool(jnp.allclose(out, ref, rtol=5e-2, atol=5e-2)), \
        float(jnp.max(jnp.abs(out - ref)))

    print("KERNEL_OK")
</pallas_src>

<mosaic_0001>
module attributes {stable_mosaic.version = 11 : i64} {
  func.func @_attention_head_kernel(%arg0: i32, %arg1: memref<64x128xf32, #tpu.memory_space<vmem>>, %arg2: memref<128x192xbf16, #tpu.memory_space<vmem>>, %arg3: memref<1x192xf32, #tpu.memory_space<vmem>>, %arg4: memref<16x256xf32, #tpu.memory_space<vmem>>) attributes {dimension_semantics = [#tpu.dimension_semantics<arbitrary>], iteration_bounds = array<i64: 1>, scalar_prefetch = 0 : i64, scratch_operands = 0 : i64, tpu.core_type = #tpu.core_type<tc>, window_params = [{pipeline_mode = #tpu.pipeline_mode<synchronous>, transform_indices = @transform_0, window_bounds = array<i64: 64, 128>}, {pipeline_mode = #tpu.pipeline_mode<synchronous>, transform_indices = @transform_1, window_bounds = array<i64: 128, 192>}, {pipeline_mode = #tpu.pipeline_mode<synchronous>, transform_indices = @transform_2, window_bounds = array<i64: 1, 192>}, {pipeline_mode = #tpu.pipeline_mode<synchronous>, transform_indices = @transform_3, window_bounds = array<i64: 16, 256>}]} {
    %c0 = arith.constant 0 : index
    %c0_0 = arith.constant 0 : index
    %0 = vector.load %arg1[%c0, %c0_0] : memref<64x128xf32, #tpu.memory_space<vmem>>, vector<64x128xf32>
    %1 = arith.truncf %0 : vector<64x128xf32> to vector<64x128xbf16>
    %c0_1 = arith.constant 0 : index
    %c0_2 = arith.constant 0 : index
    %2 = vector.load %arg2[%c0_1, %c0_2] : memref<128x192xbf16, #tpu.memory_space<vmem>>, vector<128x192xbf16>
    %cst = arith.constant dense<0.000000e+00> : vector<64x192xf32>
    %3 = tpu.matmul %1, %2, %cst {dimension_numbers = #tpu.dot_dimension_numbers<[1], [0], [0], [1], [0, 0, 1, 1], [], []>} : vector<64x128xbf16>, vector<128x192xbf16>, vector<64x192xf32> -> vector<64x192xf32>
    %c0_3 = arith.constant 0 : index
    %c0_4 = arith.constant 0 : index
    %4 = vector.load %arg3[%c0_3, %c0_4] : memref<1x192xf32, #tpu.memory_space<vmem>>, vector<1x192xf32>
    %5 = vector.broadcast %4 : vector<1x192xf32> to vector<64x192xf32>
    %6 = arith.addf %3, %5 : vector<64x192xf32>
    %7 = vector.extract_strided_slice %6 {offsets = [0, 0], sizes = [64, 64], strides = [1, 1]} : vector<64x192xf32> to vector<64x64xf32>
    %8 = vector.shape_cast %7 : vector<64x64xf32> to vector<4x16x64xf32>
    %9 = vector.extract_strided_slice %6 {offsets = [0, 64], sizes = [64, 64], strides = [1, 1]} : vector<64x192xf32> to vector<64x64xf32>
    %10 = vector.shape_cast %9 : vector<64x64xf32> to vector<4x16x64xf32>
    %11 = vector.extract_strided_slice %6 {offsets = [0, 128], sizes = [64, 64], strides = [1, 1]} : vector<64x192xf32> to vector<64x64xf32>
    %12 = vector.shape_cast %11 : vector<64x64xf32> to vector<4x16x64xf32>
    %13 = arith.truncf %8 : vector<4x16x64xf32> to vector<4x16x64xbf16>
    %14 = arith.truncf %10 : vector<4x16x64xf32> to vector<4x16x64xbf16>
    "tpu.trace_start"() <{level = 10 : i32, message = "bqd,bkd->bqk"}> : () -> ()
    %cst_5 = arith.constant dense<0.000000e+00> : vector<4x16x16xf32>
    %15 = tpu.matmul %13, %14, %cst_5 {dimension_numbers = #tpu.dot_dimension_numbers<[2], [2], [1], [1], [0, 0, 0, 1, 1, 1], [0], [0]>} : vector<4x16x64xbf16>, vector<4x16x64xbf16>, vector<4x16x16xf32> -> vector<4x16x16xf32>
    "tpu.trace_stop"() : () -> ()
    %cst_6 = arith.constant dense<0xFF800000> : vector<4x16xf32>
    %16 = vector.multi_reduction <maximumf>, %15, %cst_6 [2] : vector<4x16x16xf32> to vector<4x16xf32>
    %17 = vector.shape_cast %16 : vector<4x16xf32> to vector<4x16x1xf32>
    %18 = vector.broadcast %17 : vector<4x16x1xf32> to vector<4x16x16xf32>
    %19 = arith.subf %15, %18 : vector<4x16x16xf32>
    %20 = math.exp %19 : vector<4x16x16xf32>
    %cst_7 = arith.constant dense<0.000000e+00> : vector<4x16xf32>
    %21 = vector.multi_reduction <add>, %20, %cst_7 [2] : vector<4x16x16xf32> to vector<4x16xf32>
    %22 = vector.shape_cast %21 : vector<4x16xf32> to vector<4x16x1xf32>
    %23 = tpu.reciprocal %22 {approx = true} : vector<4x16x1xf32> -> vector<4x16x1xf32>
    %24 = vector.broadcast %23 : vector<4x16x1xf32> to vector<4x16x16xf32>
    %25 = arith.mulf %20, %24 : vector<4x16x16xf32>
    %26 = arith.truncf %25 : vector<4x16x16xf32> to vector<4x16x16xbf16>
    %27 = arith.truncf %12 : vector<4x16x64xf32> to vector<4x16x64xbf16>
    "tpu.trace_start"() <{level = 10 : i32, message = "bqk,bkd->bqd"}> : () -> ()
    %cst_8 = arith.constant dense<0.000000e+00> : vector<4x16x64xf32>
    %28 = tpu.matmul %26, %27, %cst_8 {dimension_numbers = #tpu.dot_dimension_numbers<[2], [1], [1], [2], [0, 0, 0, 1, 1, 2], [0], [0]>} : vector<4x16x16xbf16>, vector<4x16x64xbf16>, vector<4x16x64xf32> -> vector<4x16x64xf32>
    "tpu.trace_stop"() : () -> ()
    %29 = vector.extract_strided_slice %28 {offsets = [0, 0, 0], sizes = [1, 16, 64], strides = [1, 1, 1]} : vector<4x16x64xf32> to vector<1x16x64xf32>
    %30 = vector.shape_cast %29 : vector<1x16x64xf32> to vector<16x64xf32>
    %31 = vector.extract_strided_slice %28 {offsets = [1, 0, 0], sizes = [1, 16, 64], strides = [1, 1, 1]} : vector<4x16x64xf32> to vector<1x16x64xf32>
    %32 = vector.shape_cast %31 : vector<1x16x64xf32> to vector<16x64xf32>
    %33 = vector.extract_strided_slice %28 {offsets = [2, 0, 0], sizes = [1, 16, 64], strides = [1, 1, 1]} : vector<4x16x64xf32> to vector<1x16x64xf32>
    %34 = vector.shape_cast %33 : vector<1x16x64xf32> to vector<16x64xf32>
    %35 = vector.extract_strided_slice %28 {offsets = [3, 0, 0], sizes = [1, 16, 64], strides = [1, 1, 1]} : vector<4x16x64xf32> to vector<1x16x64xf32>
    %36 = vector.shape_cast %35 : vector<1x16x64xf32> to vector<16x64xf32>
    %37 = tpu.concatenate %30, %32, %34, %36 in 1 : vector<16x64xf32>, vector<16x64xf32>, vector<16x64xf32>, vector<16x64xf32> -> vector<16x256xf32>
    %c0_9 = arith.constant 0 : index
    %c0_10 = arith.constant 0 : index
    %38 = vector.load %arg4[%c0_9, %c0_10] : memref<16x256xf32, #tpu.memory_space<vmem>>, vector<16x256xf32>
    tpu.vector_store %arg4[%c0_9, %c0_10], %37 {strides = array<i32>} : memref<16x256xf32, #tpu.memory_space<vmem>>, vector<16x256xf32>,
    return
  }
  func.func @transform_0(%arg0: i32) -> (i32, i32) {
    %c0_i32 = arith.constant 0 : i32
    %c0_i32_0 = arith.constant 0 : i32
    %c0_i32_1 = arith.constant 0 : i32
    return %c0_i32, %c0_i32_0 : i32, i32
  }
  func.func @transform_1(%arg0: i32) -> (i32, i32) {
    %c0_i32 = arith.constant 0 : i32
    %c0_i32_0 = arith.constant 0 : i32
    %c0_i32_1 = arith.constant 0 : i32
    return %c0_i32, %c0_i32_0 : i32, i32
  }
  func.func @transform_2(%arg0: i32) -> (i32, i32) {
    %c0_i32 = arith.constant 0 : i32
    %c0_i32_0 = arith.constant 0 : i32
    %c0_i32_1 = arith.constant 0 : i32
    return %c0_i32, %c0_i32_0 : i32, i32
  }
  func.func @transform_3(%arg0: i32) -> (i32, i32) {
    %c0_i32 = arith.constant 0 : i32
    %c0_i32_0 = arith.constant 0 : i32
    %c0_i32_1 = arith.constant 0 : i32
    return %c0_i32, %c0_i32_0 : i32, i32
  }
}

</mosaic_0001>

<bundles_post_ra>
// kernel: tpu_custom_call.1
= control target key start
LH: loop header
LB: loop body
LE: loop exit
PB: predicated region body
PF: predicated region fallthrough
CT: control target
= control target key end

     0   :  { %v902_v2 = vmov 0   ;;  %s1104_s0 = inlined_call_operand.vmem [shape: f32[64,128], index: 0, kind: input, shape index: {}]   ;;  %s1105_s1 = inlined_call_operand.vmem [shape: bf16[128,192], index: 1, kind: input, shape index: {}]   ;;  %s1106_s2 = inlined_call_operand.vmem [shape: f32[1,192], index: 2, kind: input, shape index: {}]   ;;  %s1107_s3 = inlined_call_operand.hbm [shape: f32[16,256], index: 3, kind: output, shape index: {}]  }
   0x1   :  { %v822_v0 = vld [vmem:[%s1105_s1 + $0x4] ss:$8 sps:$4 sm:$0xff]   ;;  %v824_v1 = vld [vmem:[%s1105_s1] ss:$8 sps:$4 sm:$0xff]   ;;  %168 = vmatprep.mubr.bf16.mxu0 %v902_v2  ;;  %v825_v3 = vld [vmem:[%s1105_s1 + $0x14] ss:$8 sps:$4 sm:$0xff]  }
   0x2   :  { %136 = vmatprep.subr.bf16.mxu0 %v822_v0  ;;  %v827_v4 = vld [vmem:[%s1105_s1 + $0x10] ss:$8 sps:$4 sm:$0xff]   ;;  %v828_v5 = vld [vmem:[%s1105_s1 + $0x24] ss:$8 sps:$4 sm:$0xff]   ;;  %v830_v6 = vld [vmem:[%s1105_s1 + $0x20] ss:$8 sps:$4 sm:$0xff]  }
   0x3   :  { %137 = vmatpush1.bf16.msra.mxu0 %v824_v1  ;;  %v831_v7 = vld [vmem:[%s1105_s1 + $0x34] ss:$8 sps:$4 sm:$0xff]   ;;  %v833_v8 = vld [vmem:[%s1105_s1 + $0x30] ss:$8 sps:$4 sm:$0xff]   ;;  %v834_v9 = vld [vmem:[%s1105_s1 + $0x44] ss:$8 sps:$4 sm:$0xff]  }
   0x4   :  { %138 = vmatprep.subr.bf16.mxu0 %v825_v3 }
   0x7   :  { %139 = vmatpush1.bf16.msra.mxu0 %v827_v4 }
   0x8   :  { %140 = vmatprep.subr.bf16.mxu0 %v828_v5 }
   0xb   :  { %141 = vmatpush1.bf16.msra.mxu0 %v830_v6 }
   0xc   :  { %142 = vmatprep.subr.bf16.mxu0 %v831_v7 }
   0xd   :  { %8 = vsyncpa [#allocation3], 0  ;;  %v836_v10 = vld [vmem:[%s1105_s1 + $0x40] ss:$8 sps:$4 sm:$0xff]   ;;  %v837_v11 = vld [vmem:[%s1105_s1 + $0x54] ss:$8 sps:$4 sm:$0xff]   ;;  %v46_v30 = vlaneseq }
   0xe   :  { %v839_v12 = vld [vmem:[%s1105_s1 + $0x50] ss:$8 sps:$4 sm:$0xff]   ;;  %v840_v13 = vld [vmem:[%s1105_s1 + $0x64] ss:$8 sps:$4 sm:$0xff]   ;;  %v842_v14 = vld [vmem:[%s1105_s1 + $0x60] ss:$8 sps:$4 sm:$0xff]  }
   0xf   :  { %143 = vmatpush1.bf16.msra.mxu0 %v833_v8  ;;  %v843_v15 = vld [vmem:[%s1105_s1 + $0x74] ss:$8 sps:$4 sm:$0xff]   ;;  %v845_v16 = vld [vmem:[%s1105_s1 + $0x70] ss:$8 sps:$4 sm:$0xff]   ;;  %v16_v17 = vld [vmem:[%s1104_s0] sm:$0xff]  ;;  %v903_v29 = vmov 0.0  }
  0x10   :  { %144 = vmatprep.subr.bf16.mxu0 %v834_v9  ;;  %v17_v18 = vld [vmem:[%s1104_s0 + $0x8] sm:$0xff]  ;;  %v18_v20 = vld [vmem:[%s1104_s0 + $0x10] sm:$0xff]  ;;  %v19_v21 = vld [vmem:[%s1104_s0 + $0x18] sm:$0xff]  ;;  %767 = vmatprep.subr.bf16.mxu1 %v903_v29  ;;  %v47_v31 = vshrl.u32 %v46_v30, 7  ;;  %vm904_vm0 = vmmov 0   ;;  %vm216_vm1 = vcmask 523264  }
  0x11   :  { %v24_v19 = vpack.c.bf16 %v17_v18, %v16_v17  ;;  %v25_v22 = vpack.c.bf16 %v19_v21, %v18_v20  ;;  %v20_v23 = vld [vmem:[%s1104_s0 + $0x20] sm:$0xff]  ;;  %v21_v24 = vld [vmem:[%s1104_s0 + $0x28] sm:$0xff]  ;;  %v22_v26 = vld [vmem:[%s1104_s0 + $0x30] sm:$0xff]  ;;  %769 = vmatprep.mubr.msk.bf16.mxu1 %vm904_vm0, %v903_v29  ;;  %vm414_vm2 = vcmask 130048  }
  0x12   :  { %v26_v25 = vpack.c.bf16 %v21_v24, %v20_v23  ;;  %v23_v27 = vld [vmem:[%s1104_s0 + $0x38] sm:$0xff]  ;;  %v52_v32 = vsub.s32 1, %v47_v31  ;;  %v44_v33 = vld [vmem:[%s1106_s2] sm:$0x3]  ;;  %v48_v34 = vsub.s32 0, %v47_v31  ;;  %s905_s0 = smov 64  }
  0x13   :  { %145 = vmatpush1.bf16.msra.mxu0 %v836_v10  ;;  %v27_v28 = vpack.c.bf16 %v23_v27, %v22_v26  ;;  %s906_s2 = smov [#allocation2]  }
  0x14   :  { %146 = vmatprep.subr.bf16.mxu0 %v837_v11  ;;  %v53_v35 = vrot.slane %v44_v33, %v52_v32  ;;  %v49_v36 = vrot.slane %v44_v33, %v48_v34  ;;  %s716_s7 = sshll.u32 %s906_s2, 4  ;;  %s717_s7 = int_to_ptr.vmem [resolvable:$true] %s716_s7 }
  0x15   :  { %s878_s8 = scalar_lea.vmem %s717_s7, 512  ;;  %p883_p1 = scmp.lt.s32.totalorder %s717_s7, %s717_s7 }
  0x16   :  { %p879_p0 = scmp.ne.s32.totalorder %s717_s7, %s878_s8  ;;  %p884_p2 = scmp.lt.s32.totalorder %s878_s8, %s878_s8 }
  0x17   :  { %147 = vmatpush1.bf16.msra.mxu0 %v839_v12 }
  0x18   :  { %148 = vmatprep.subr.bf16.mxu0 %v840_v13  ;;  %p885_p3 = por %p884_p2, %p883_p1 }
  0x1a   :  { %p886_p4 = pnand %p885_p3, %p879_p0 }
  0x1b   :  { %149 = vmatpush1.bf16.msra.mxu0 %v842_v14 }
  0x1c   :  { %150 = vmatprep.subr.bf16.mxu0 %v843_v15 }
  0x1f   :  { %151 = vmatpush1.bf16.msra.mxu0 %v845_v16 }
  0x20   :  { %809 = vmatprep.subr.bf16.mxu0 %v903_v29 }
  0x22   :  { %169 = vmatmul.mubr.bf16.vlgmr.msra.gmra.mrb[0].mxu0 %v24_v19 }
  0x23   :  { %178 = vmatprep.mubr.bf16.mxu0 %v902_v2 }
  0x2a   :  { %179 = vmatmul.mubr.bf16.gmra.mrb[4].mxu0 %v25_v22 }
  0x2b   :  { %188 = vmatprep.mubr.bf16.mxu0 %v902_v2 }
  0x32   :  { %189 = vmatmul.mubr.bf16.gmra.mrb[8].mxu0 %v26_v25 }
  0x33   :  { %198 = vmatprep.mubr.bf16.mxu0 %v902_v2 }
  0x3a   :  { %199 = vmatmul.mubr.bf16.gmra.mrb[12].mxu0 %v27_v28 }
  0x3b   :  { %811 = vmatprep.mubr.msk.bf16.mxu0 %vm904_vm0, %v903_v29 }
  0xf5   :  { %v170_v37 = vpop.f32.mrb[0].mxu0 }
  0xf6   :  { %v172_v38 = vpop.f32.mrb[1].mxu0  ;;  %v171_v41 = vadd.f32 %v170_v37, %v49_v36 }
  0xf7   :  { %v1010_v39 = vadd.f32 %v172_v38, %v53_v35  ;;  %v174_v40 = vpop.f32.mrb[2].mxu0 }
  0xf8   :  { %v175_v42 = vadd.f32 %v174_v40, %v49_v36  ;;  %v176_v43 = vpop.f32.mrb[3].mxu0 }
  0xf9   :  { %v1012_v44 = vadd.f32 %v176_v43, %v53_v35 }
  0xfa   :  { %v209_v45 = vpack.c.bf16 %v175_v42, %v171_v41 }
  0xfb   :  { %v507_v46 = vpack.c.bf16 %v1012_v44, %v1010_v39 }
  0xfc   :  { %214 = vrot.lane.b32.xlu0 %v209_v45, %s905_s0 }
  0xfd   :  { %v180_v47 = vpop.f32.mrb[4].mxu0 }
  0xfe   :  { %v182_v48 = vpop.f32.mrb[5].mxu0  ;;  %v181_v51 = vadd.f32 %v180_v47, %v49_v36 }
  0xff   :  { %v1017_v49 = vadd.f32 %v182_v48, %v53_v35  ;;  %v184_v50 = vpop.f32.mrb[6].mxu0 }
 0x100   :  { %v185_v52 = vadd.f32 %v184_v50, %v49_v36  ;;  %v186_v53 = vpop.f32.mrb[7].mxu0 }
 0x101   :  { %v1019_v54 = vadd.f32 %v186_v53, %v53_v35 }
 0x102   :  { %v210_v55 = vpack.c.bf16 %v185_v52, %v181_v51 }
 0x103   :  { %v508_v56 = vpack.c.bf16 %v1019_v54, %v1017_v49 }
 0x104   :  { %265 = vrot.lane.b32.xlu0 %v210_v55, %s905_s0 }
 0x105   :  { %v190_v57 = vpop.f32.mrb[8].mxu0 }
 0x106   :  { %v192_v58 = vpop.f32.mrb[9].mxu0  ;;  %v191_v61 = vadd.f32 %v190_v57, %v49_v36 }
 0x107   :  { %v1024_v59 = vadd.f32 %v192_v58, %v53_v35  ;;  %v194_v60 = vpop.f32.mrb[10].mxu0 }
 0x108   :  { %v195_v62 = vadd.f32 %v194_v60, %v49_v36  ;;  %v196_v63 = vpop.f32.mrb[11].mxu0 }
 0x109   :  { %v1026_v0 = vadd.f32 %v196_v63, %v53_v35 }
 0x10a   :  { %v211_v1 = vpack.c.bf16 %v195_v62, %v191_v61 }
 0x10b   :  { %v509_v2 = vpack.c.bf16 %v1026_v0, %v1024_v59 }
 0x10c   :  { %315 = vrot.lane.b32.xlu1 %v211_v1, %s905_s0 }
 0x10d   :  { %v200_v3 = vpop.f32.mrb[12].mxu0 }
 0x10e   :  { %v202_v4 = vpop.f32.mrb[13].mxu0  ;;  %v201_v6 = vadd.f32 %v200_v3, %v49_v36 }
 0x10f   :  { %v204_v5 = vpop.f32.mrb[14].mxu0  ;;  %v203_v9 = vadd.f32 %v202_v4, %v53_v35 }
 0x110   :  { %v205_v7 = vadd.f32 %v204_v5, %v49_v36  ;;  %v206_v8 = vpop.f32.mrb[15].mxu0 }
 0x111   :  { %v207_v10 = vadd.f32 %v206_v8, %v53_v35 }
 0x112   :  { %v212_v11 = vpack.c.bf16 %v205_v7, %v201_v6 }
 0x113   :  { %v510_v12 = vpack.c.bf16 %v207_v10, %v203_v9 }
 0x114   :  { %365 = vrot.lane.b32.xlu1 %v212_v11, %s905_s0 }
 0x115   :  { %810 = vmatpush3.bf16.msra.mxu0 %v510_v12 }
 0x16e   :  { %v215_v13 = vpop.permute.xlu0 %214 }
 0x16f   :  { %v221_v14 = vsel %vm216_vm1, %v215_v13, 0 }
 0x170   :  { %768 = vmatpush3.bf16.xpose.msra.mxu1 %v221_v14 }
 0x171   :  { %773 = vmatprep.subr.bf16.mxu1 %v903_v29 }
 0x176   :  { %v266_v15 = vpop.permute.xlu0 %265 }
 0x177   :  { %v271_v16 = vsel %vm216_vm1, %v266_v15, 0  ;;  %770 = vmatmul.mubr.msk.bf16.vlgmr.msra.gmra.mrb[0].mxu1 %vm216_vm1, %v209_v45 }
 0x178   :  { %774 = vmatpush3.bf16.xpose.msra.mxu1 %v271_v16  ;;  %775 = vmatprep.mubr.msk.bf16.mxu1 %vm904_vm0, %v903_v29 }
 0x179   :  { %779 = vmatprep.subr.bf16.mxu1 %v903_v29 }
 0x17e   :  { %v316_v17 = vpop.permute.xlu1 %315 }
 0x17f   :  { %v321_v18 = vsel %vm216_vm1, %v316_v17, 0  ;;  %776 = vmatmul.mubr.msk.bf16.vlgmr.msra.gmra.mrb[4].mxu1 %vm216_vm1, %v210_v55 }
 0x180   :  { %780 = vmatpush3.bf16.xpose.msra.mxu1 %v321_v18  ;;  %781 = vmatprep.mubr.msk.bf16.mxu1 %vm904_vm0, %v903_v29 }
 0x181   :  { %785 = vmatprep.subr.bf16.mxu1 %v903_v29 }
 0x186   :  { %v366_v19 = vpop.permute.xlu1 %365 }
 0x187   :  { %v371_v20 = vsel %vm216_vm1, %v366_v19, 0  ;;  %782 = vmatmul.mubr.msk.bf16.vlgmr.msra.gmra.mrb[8].mxu1 %vm216_vm1, %v211_v1 }
 0x188   :  { %786 = vmatpush3.bf16.xpose.msra.mxu1 %v371_v20  ;;  %787 = vmatprep.mubr.msk.bf16.mxu1 %vm904_vm0, %v903_v29 }
 0x189   :  { %791 = vmatprep.subr.bf16.mxu1 %v903_v29 }
 0x18f   :  { %788 = vmatmul.mubr.msk.bf16.vlgmr.msra.gmra.mrb[12].mxu1 %vm216_vm1, %v212_v11 }
 0x190   :  { %792 = vmatpush3.bf16.msra.mxu1 %v507_v46  ;;  %793 = vmatprep.mubr.msk.bf16.mxu1 %vm904_vm0, %v903_v29 }
 0x191   :  { %797 = vmatprep.subr.bf16.mxu1 %v903_v29 }
 0x24a   :  { %v257_v21 = vpop.f32.mrb[0].mxu1 }
 0x24b   :  { %v771_v22 = vpop.f32.mrb[1].mxu1  ;;  %v415_v23 = vsel %vm414_vm2, %v257_v21, -inf }
 0x24c   :  { %416 = vmax.xlane.f32.xlu0 %v415_v23  ;;  %v260_v24 = vpop.f32.mrb[2].mxu1 }
 0x24d   :  { %v772_v25 = vpop.f32.mrb[3].mxu1  ;;  %v418_v26 = vsel %vm414_vm2, %v260_v24, -inf }
 0x24e   :  { %419 = vmax.xlane.f32.xlu1 %v418_v26 }
 0x252   :  { %v307_v27 = vpop.f32.mrb[4].mxu1 }
 0x253   :  { %v777_v28 = vpop.f32.mrb[5].mxu1  ;;  %v421_v30 = vsel %vm414_vm2, %v307_v27, -inf }
 0x254   :  { %422 = vmax.xlane.f32.xlu0 %v421_v30  ;;  %v310_v31 = vpop.f32.mrb[6].mxu1 }
 0x255   :  { %v778_v32 = vpop.f32.mrb[7].mxu1  ;;  %v424_v33 = vsel %vm414_vm2, %v310_v31, -inf }
 0x258   :  { %425 = vmax.xlane.f32.xlu0 %v424_v33 }
 0x25a   :  { %v357_v34 = vpop.f32.mrb[8].mxu1 }
 0x25b   :  { %v783_v35 = vpop.f32.mrb[9].mxu1  ;;  %v427_v44 = vsel %vm414_vm2, %v357_v34, -inf }
 0x25c   :  { %v360_v36 = vpop.f32.mrb[10].mxu1 }
 0x25d   :  { %v784_v37 = vpop.f32.mrb[11].mxu1  ;;  %v430_v45 = vsel %vm414_vm2, %v360_v36, -inf }
 0x262   :  { %v407_v38 = vpop.f32.mrb[12].mxu1 }
 0x263   :  { %v789_v39 = vpop.f32.mrb[13].mxu1  ;;  %v433_v40 = vsel %vm414_vm2, %v407_v38, -inf }
 0x264   :  { %434 = vmax.xlane.f32.xlu1 %v433_v40  ;;  %v410_v41 = vpop.f32.mrb[14].mxu1 }
 0x265   :  { %v790_v42 = vpop.f32.mrb[15].mxu1  ;;  %v436_v43 = vsel %vm414_vm2, %v410_v41, -inf }
 0x266   :  { %437 = vmax.xlane.f32.xlu0 %v436_v43 }
 0x268   :  { %428 = vmax.xlane.f32.xlu1 %v427_v44 }
 0x26a   :  { %431 = vmax.xlane.f32.xlu0 %v430_v45 }
 0x2d9   :  { %v417_v46 = vpop.xlane.xlu0 %416 }
 0x2da   :  { %v439_v47 = vsub.f32 %v257_v21, %v417_v46 }
 0x2db   :  { %v420_v48 = vpop.xlane.xlu1 %419 }
 0x2dc   :  { %v447_v50 = vmul.f32 1.442695, %v439_v47  ;;  %v440_v51 = vsub.f32 %v260_v24, %v420_v48 }
 0x2de   :  { %846 = vpow2.f32 %v447_v50  ;;  %v449_v52 = vmul.f32 1.442695, %v440_v51 }
 0x2e0   :  { %848 = vpow2.f32 %v449_v52 }
 0x2e1   :  { %v423_v53 = vpop.xlane.xlu0 %422 }
 0x2e2   :  { %v441_v55 = vsub.f32 %v307_v27, %v423_v53 }
 0x2e4   :  { %v451_v57 = vmul.f32 1.442695, %v441_v55 }
 0x2e5   :  { %v426_v58 = vpop.xlane.xlu0 %425 }
 0x2e6   :  { %850 = vpow2.f32 %v451_v57  ;;  %v442_v60 = vsub.f32 %v310_v31, %v426_v58 }
 0x2e8   :  { %v847_v61 = vpop.eup %846  ;;  %v453_v62 = vmul.f32 1.442695, %v442_v60 }
 0x2e9   :  { %v463_v63 = vsel %vm414_vm2, %v847_v61, 0.0 }
 0x2ea   :  { %v849_v1 = vpop.eup %848  ;;  %852 = vpow2.f32 %v453_v62  ;;  %464 = vadd.xlane.f32.xlu1 %v463_v63 }
 0x2eb   :  { %v466_v3 = vsel %vm414_vm2, %v849_v1, 0.0 }
 0x2ec   :  { %467 = vadd.xlane.f32.xlu0 %v466_v3 }
 0x2f0   :  { %v851_v4 = vpop.eup %850 }
 0x2f1   :  { %v435_v5 = vpop.xlane.xlu1 %434  ;;  %v469_v6 = vsel %vm414_vm2, %v851_v4, 0.0 }
 0x2f2   :  { %v445_v7 = vsub.f32 %v407_v38, %v435_v5  ;;  %470 = vadd.xlane.f32.xlu1 %v469_v6 }
 0x2f3   :  { %v438_v8 = vpop.xlane.xlu0 %437 }
 0x2f4   :  { %v853_v9 = vpop.eup %852  ;;  %v459_v10 = vmul.f32 1.442695, %v445_v7  ;;  %v446_v11 = vsub.f32 %v410_v41, %v438_v8 }
 0x2f5   :  { %v429_v12 = vpop.xlane.xlu1 %428  ;;  %v472_v13 = vsel %vm414_vm2, %v853_v9, 0.0 }
 0x2f6   :  { %854 = vpow2.f32 %v459_v10  ;;  %v461_v14 = vmul.f32 1.442695, %v446_v11  ;;  %v443_v15 = vsub.f32 %v357_v34, %v429_v12  ;;  %473 = vadd.xlane.f32.xlu0 %v472_v13 }
 0x2f7   :  { %v432_v16 = vpop.xlane.xlu0 %431 }
 0x2f8   :  { %856 = vpow2.f32 %v461_v14  ;;  %v455_v17 = vmul.f32 1.442695, %v443_v15  ;;  %v444_v18 = vsub.f32 %v360_v36, %v432_v16 }
 0x2fa   :  { %858 = vpow2.f32 %v455_v17  ;;  %v457_v19 = vmul.f32 1.442695, %v444_v18 }
 0x2fc   :  { %860 = vpow2.f32 %v457_v19 }
 0x300   :  { %v855_v20 = vpop.eup %854 }
 0x301   :  { %v481_v21 = vsel %vm414_vm2, %v855_v20, 0.0 }
 0x302   :  { %v857_v22 = vpop.eup %856  ;;  %482 = vadd.xlane.f32.xlu1 %v481_v21 }
 0x303   :  { %v484_v23 = vsel %vm414_vm2, %v857_v22, 0.0 }
 0x304   :  { %v859_v24 = vpop.eup %858  ;;  %485 = vadd.xlane.f32.xlu0 %v484_v23 }
 0x305   :  { %v475_v25 = vsel %vm414_vm2, %v859_v24, 0.0 }
 0x306   :  { %v861_v26 = vpop.eup %860  ;;  %476 = vadd.xlane.f32.xlu1 %v475_v25 }
 0x307   :  { %v478_v27 = vsel %vm414_vm2, %v861_v26, 0.0 }
 0x308   :  { %479 = vadd.xlane.f32.xlu0 %v478_v27 }
 0x377   :  { %v465_v28 = vpop.xlane.xlu1 %464 }
 0x378   :  { %862 = vrcp.f32 %v465_v28 }
 0x379   :  { %v468_v30 = vpop.xlane.xlu0 %467 }
 0x37a   :  { %864 = vrcp.f32 %v468_v30 }
 0x37f   :  { %v471_v31 = vpop.xlane.xlu1 %470 }
 0x380   :  { %866 = vrcp.f32 %v471_v31 }
 0x382   :  { %v863_v32 = vpop.eup %862 }
 0x383   :  { %v474_v33 = vpop.xlane.xlu0 %473  ;;  %v495_v35 = vmul.f32 %v863_v32, %v847_v61 }
 0x384   :  { %v865_v34 = vpop.eup %864  ;;  %868 = vrcp.f32 %v474_v33 }
 0x385   :  { %v496_v36 = vmul.f32 %v865_v34, %v849_v1 }
 0x387   :  { %v503_v37 = vpack.c.bf16 %v496_v36, %v495_v35 }
 0x389   :  { %794 = vmatmul.mubr.msk.bf16.vlgmr.msra.gmra.mrb[16].mxu1 %vm414_vm2, %v503_v37 }
 0x38a   :  { %798 = vmatpush3.bf16.msra.mxu1 %v508_v56  ;;  %799 = vmatprep.mubr.msk.bf16.mxu1 %vm904_vm0, %v903_v29  ;;  %v867_v38 = vpop.eup %866 }
 0x38b   :  { %803 = vmatprep.subr.bf16.mxu1 %v903_v29  ;;  %v497_v40 = vmul.f32 %v867_v38, %v851_v4 }
 0x38e   :  { %v869_v39 = vpop.eup %868 }
 0x38f   :  { %v498_v41 = vmul.f32 %v869_v39, %v853_v9  ;;  %v483_v42 = vpop.xlane.xlu1 %482 }
 0x390   :  { %870 = vrcp.f32 %v483_v42 }
 0x391   :  { %v486_v43 = vpop.xlane.xlu0 %485  ;;  %v504_v44 = vpack.c.bf16 %v498_v41, %v497_v40 }
 0x392   :  { %872 = vrcp.f32 %v486_v43 }
 0x393   :  { %v477_v45 = vpop.xlane.xlu1 %476  ;;  %800 = vmatmul.mubr.msk.bf16.vlgmr.msra.gmra.mrb[20].mxu1 %vm414_vm2, %v504_v44 }
 0x394   :  { %874 = vrcp.f32 %v477_v45  ;;  %804 = vmatpush3.bf16.msra.mxu1 %v509_v2  ;;  %805 = vmatprep.mubr.msk.bf16.mxu1 %vm904_vm0, %v903_v29 }
 0x395   :  { %v480_v49 = vpop.xlane.xlu0 %479 }
 0x396   :  { %876 = vrcp.f32 %v480_v49 }
 0x39a   :  { %v871_v54 = vpop.eup %870 }
 0x39b   :  { %v501_v46 = vmul.f32 %v871_v54, %v855_v20 }
 0x39c   :  { %v873_v56 = vpop.eup %872 }
 0x39d   :  { %v502_v47 = vmul.f32 %v873_v56, %v857_v22 }
 0x39e   :  { %v875_v48 = vpop.eup %874 }
 0x39f   :  { %v506_v50 = vpack.c.bf16 %v502_v47, %v501_v46  ;;  %v499_v52 = vmul.f32 %v875_v48, %v859_v24 }
 0x3a0   :  { %v877_v51 = vpop.eup %876 }
 0x3a1   :  { %v500_v53 = vmul.f32 %v877_v51, %v861_v26  ;;  %812 = vmatmul.mubr.msk.bf16.vlgmr.msra.gmra.mrb[16].mxu0 %vm414_vm2, %v506_v50 }
 0x3a3   :  { %v505_v55 = vpack.c.bf16 %v500_v53, %v499_v52 }
 0x3a5   :  { %806 = vmatmul.mubr.msk.bf16.vlgmr.msra.gmra.mrb[24].mxu1 %vm414_vm2, %v505_v55 }
 0x45c   :  { %v548_v59 = vpop.f32.mrb[16].mxu1 }
 0x45d   :  { %v795_v0 = vpop.f32.mrb[17].mxu1 }
 0x45e   :  { %v551_v2 = vpop.f32.mrb[18].mxu1 }
 0x45f   :  { %v796_v29 = vpop.f32.mrb[19].mxu1 }
 0x466   :  { %v592_v57 = vpop.f32.mrb[20].mxu1 }
 0x467   :  { %689 = vrot.lane.b32.xlu1 %v592_v57, %s905_s0  ;;  %v801_v58 = vpop.f32.mrb[21].mxu1 }
 0x468   :  { %v595_v60 = vpop.f32.mrb[22].mxu1 }
 0x469   :  { %691 = vrot.lane.b32.xlu0 %v595_v60, %s905_s0  ;;  %v802_v61 = vpop.f32.mrb[23].mxu1 }
 0x474   :  { %v680_v62 = vpop.f32.mrb[16].mxu0 }
 0x475   :  { %697 = vrot.lane.b32.xlu1 %v680_v62, %s905_s0  ;;  %v813_v63 = vpop.f32.mrb[17].mxu0 }
 0x476   :  { %v683_v1 = vpop.f32.mrb[18].mxu0 }
 0x477   :  { %v814_v3 = vpop.f32.mrb[19].mxu0 }
 0x478   :  { %v636_v4 = vpop.f32.mrb[24].mxu1 }
 0x479   :  { %699 = vrot.lane.b32.xlu1 %v683_v1, %s905_s0  ;;  %v807_v5 = vpop.f32.mrb[25].mxu1 }
 0x47a   :  { %v639_v6 = vpop.f32.mrb[26].mxu1 }
 0x47b   :  { %v808_v7 = vpop.f32.mrb[27].mxu1 }
 0x4d9   :  { %v690_v8 = vpop.permute.xlu1 %689 }
 0x4da   :  { %v703_v9 = vsel %vm216_vm1, %v548_v59, %v690_v8 }
 0x4db   :  { %707 = vst [vmem:[#allocation2] sm:$0xff] %v703_v9  ;;  %v692_v10 = vpop.permute.xlu0 %691 }
 0x4dc   :  { %v704_v11 = vsel %vm216_vm1, %v551_v2, %v692_v10 }
 0x4dd   :  { %709 = vst [vmem:[#allocation2 + $0x10] sm:$0xff] %v704_v11 }
 0x4e7   :  { %v698_v12 = vpop.permute.xlu1 %697 }
 0x4e8   :  { %v705_v13 = vsel %vm216_vm1, %v636_v4, %v698_v12 }
 0x4e9   :  { %708 = vst [vmem:[#allocation2 + $0x8] sm:$0xff] %v705_v13 }
 0x4eb   :  { %v700_v14 = vpop.permute.xlu1 %699 }
 0x4ec   :  { %v706_v15 = vsel %vm216_vm1, %v639_v6, %v700_v14 }
 0x4ed   :  { %710 = vst [vmem:[#allocation2 + $0x18] sm:$0xff] %v706_v15 }
 0x4ee   :  { %889 = shalt.err (!%p886_p4)
}
 0x4ef   :  { %s890_s11 = scalar_lea.hbm %s1107_s3, 512 }
 0x4f0   :  { %p891_p5 = scmp.ne.s32.totalorder %s1107_s3, %s890_s11  ;;  %p894_p6 = scmp.lt.u32.totalorder %s890_s11, %s1107_s3 }
 0x4f2   :  { %p896_p7 = pnand %p894_p6, %p891_p5 }
 0x4f4   :  { %899 = shalt.err (!%p896_p7)
}
 0x4f5   :  { %s907_s16 = smov 256   ;;  %s908_s17 = smov 16  }
 0x4f6   :  { %722 = dma.vmem_to_hbm [thread:$0]  %s717_s7, 512, %s1107_s3, [#allocation3], %s907_s16, %s907_s16, %s908_s17  }
 0x4f7   :  { %900 = dma.done.wait [#allocation3], 512  }
 0x4f8   :  { %901 = vsyncadd [#allocation3], 4294966784 }
 0x4f9   :  { %726 = vsyncpa [#allocation3], 1 }

</bundles_post_ra>
